<compile_context>
chip_gen: v5e
topology: v5e:2x2
jax: 0.10.0
libtpu: 0.0.40
codegen_flags: <defaults>
</compile_context>

<pallas_src>
import jax
import jax.numpy as jnp
from jax.experimental import pallas as pl
from jax.experimental.pallas import tpu as pltpu


def _half_pos_tanh_kernel(x_ref, o_ref):
    # tanh -> EUP slot; *0.5 + 0.5 rides free in spare VALU slots under the
    # DMA bottleneck. Compute in f32 (free) for dtype-robust accuracy.
    x = x_ref[...].astype(jnp.float32)
    o_ref[...] = (jnp.tanh(x) * 0.5 + 0.5).astype(o_ref.dtype)


_LANE = 128


def _sublanes_for(dtype) -> int:
    # Dtype-aware sublane granularity: 8 for 4-byte, 16 for bf16, 32 for int8/fp8.
    itemsize = jnp.dtype(dtype).itemsize
    return max(8, 32 // max(itemsize, 1))


def _choose_width(n: int):
    """Largest lane-dense width that divides n exactly (zero-copy reshape)."""
    for width in (4096, 2048, 1024, 512, 256, _LANE):
        if n % width == 0:
            return width
    return None


def _block_config():
    """Generation-aware (block_bytes, vmem_limit_bytes|None).

    Double-buffering multiplies the footprint by 4 (2 bufs x in+out), so the
    footprint is 4 * block_bytes; keep it under the scoped VMEM limit we set.
    """
    kind = ""
    try:
        kind = jax.devices()[0].device_kind.lower()
    except Exception:
        pass
    vmem_cap = None
    try:
        vmem_cap = int(pltpu.get_tpu_info().vmem_capacity_bytes)
    except Exception:
        pass

    if "v7" in kind or (vmem_cap is not None and vmem_cap <= 80 * (1 << 20)):
        # v7x: 64 MiB physical VMEM, 3.2 TB/s HBM -> bigger blocks amortize the
        # ~0.35 us per-step overhead; 24 MiB footprint stays well under 64 MiB.
        return 6 * (1 << 20), 40 << 20
    if "v6" in kind:
        # v6e: 128 MiB physical; 32 MiB footprint with raised scoped limit.
        return 8 * (1 << 20), 64 << 20
    if "v5" in kind:
        # v5e: keep the footprint under the 16 MiB default scoped VMEM; at
        # 0.82 TB/s the per-step overhead is already well amortized at 3 MiB.
        return 3 * (1 << 20), None
    # Unknown generation: conservative default that fits everywhere.
    return 2 * (1 << 20), None


def half_pos_tanh(x: jax.Array) -> jax.Array:
    """Applies (tanh(x) + 1) / 2 elementwise via a Pallas TPU kernel."""
    orig_shape = x.shape
    dtype = x.dtype
    if not jnp.issubdtype(dtype, jnp.floating):
        raise TypeError(f"half_pos_tanh expects a floating-point input, got {dtype}")
    n = x.size
    if n == 0:
        return x

    width = _choose_width(n)
    if width is None:
        # n % 128 != 0: a single fused XLA pass is bandwidth-optimal; any
        # pad/slice/concat around a custom call would add a full HBM pass.
        return (jnp.tanh(x.astype(jnp.float32)) * 0.5 + 0.5).astype(dtype)

    rows = n // width
    x2d = x.reshape(rows, width)  # zero-copy reshape

    sublanes = _sublanes_for(dtype)
    itemsize = jnp.dtype(dtype).itemsize
    block_bytes, vmem_limit = _block_config()

    # Row-stripe tile targeting ~block_bytes, aligned to the dtype sublane tile.
    tr = block_bytes // (width * itemsize)
    tr = max(sublanes, (tr // sublanes) * sublanes)
    tr = min(tr, rows)  # tr == rows hits the full-dim exemption of the (8,128) rule

    grid = (pl.cdiv(rows, tr),)  # ragged last block handled by Pallas masking

    cp_kwargs = dict(
        # Shards the grid across v7x's 2 TensorCores; no-op on v5e/v6e (1 TC).
        dimension_semantics=("parallel",),
    )
    if vmem_limit is not None:
        cp_kwargs["vmem_limit_bytes"] = vmem_limit

    out2d = pl.pallas_call(
        _half_pos_tanh_kernel,
        out_shape=jax.ShapeDtypeStruct((rows, width), dtype),
        grid_spec=pltpu.PrefetchScalarGridSpec(
            num_scalar_prefetch=0,
            grid=grid,
            in_specs=[pl.BlockSpec((tr, width), lambda i: (i, 0))],
            out_specs=pl.BlockSpec((tr, width), lambda i: (i, 0)),
        ),
        compiler_params=pltpu.CompilerParams(**cp_kwargs),
        cost_estimate=pl.CostEstimate(
            flops=2 * n,                      # mul + add
            transcendentals=n,                # tanh
            bytes_accessed=2 * n * itemsize,  # one read + one write
        ),
    )(x2d)

    return out2d.reshape(orig_shape)


if __name__ == "__main__":
    key = jax.random.PRNGKey(0)
    # Small NCHW input consistent with a conv-style module: (batch=2, C=4, H=16, W=16)
    x = jax.random.normal(key, (2, 4, 16, 16), dtype=jnp.float32)

    y = half_pos_tanh(x)
    y = jax.block_until_ready(y)

    # Reference check against plain JAX.
    y_ref = (jnp.tanh(x) + 1.0) / 2.0
    assert y.shape == x.shape and y.dtype == x.dtype
    assert jnp.allclose(y, y_ref, atol=1e-6, rtol=1e-6)

    # Awkward-size fallback path (n % 128 != 0): single fused jnp pass.
    x_odd = jax.random.normal(jax.random.PRNGKey(1), (3, 5, 7), dtype=jnp.float32)
    y_odd = jax.block_until_ready(half_pos_tanh(x_odd))
    assert jnp.allclose(y_odd, (jnp.tanh(x_odd) + 1.0) / 2.0, atol=1e-6, rtol=1e-6)

    print("KERNEL_OK")
</pallas_src>

<mosaic_0001>
module attributes {stable_mosaic.version = 11 : i64} {
  func.func @_half_pos_tanh_kernel(%arg0: i32, %arg1: memref<1x2048xf32, #tpu.memory_space<vmem>>, %arg2: memref<1x2048xf32, #tpu.memory_space<vmem>>) attributes {dimension_semantics = [#tpu.dimension_semantics<parallel>], iteration_bounds = array<i64: 1>, scalar_prefetch = 0 : i64, scratch_operands = 0 : i64, tpu.core_type = #tpu.core_type<tc>, window_params = [{transform_indices = @transform_0, window_bounds = array<i64: 1, 2048>}, {transform_indices = @transform_1, window_bounds = array<i64: 1, 2048>}]} {
    %c0 = arith.constant 0 : index
    %c0_0 = arith.constant 0 : index
    %0 = vector.load %arg1[%c0, %c0_0] : memref<1x2048xf32, #tpu.memory_space<vmem>>, vector<1x2048xf32>
    %1 = math.tanh %0 : vector<1x2048xf32>
    %cst = arith.constant 5.000000e-01 : f32
    %2 = vector.broadcast %cst : f32 to vector<1x2048xf32>
    %3 = arith.mulf %1, %2 : vector<1x2048xf32>
    %cst_1 = arith.constant 5.000000e-01 : f32
    %4 = vector.broadcast %cst_1 : f32 to vector<1x2048xf32>
    %5 = arith.addf %3, %4 : vector<1x2048xf32>
    %c0_2 = arith.constant 0 : index
    %c0_3 = arith.constant 0 : index
    %6 = vector.load %arg2[%c0_2, %c0_3] : memref<1x2048xf32, #tpu.memory_space<vmem>>, vector<1x2048xf32>
    tpu.vector_store %arg2[%c0_2, %c0_3], %5 {strides = array<i32>} : memref<1x2048xf32, #tpu.memory_space<vmem>>, vector<1x2048xf32>,
    return
  }
  func.func @transform_0(%arg0: i32) -> (i32, i32) {
    %c0_i32 = arith.constant 0 : i32
    %c0_i32_0 = arith.constant 0 : i32
    return %arg0, %c0_i32 : i32, i32
  }
  func.func @transform_1(%arg0: i32) -> (i32, i32) {
    %c0_i32 = arith.constant 0 : i32
    %c0_i32_0 = arith.constant 0 : i32
    return %arg0, %c0_i32 : i32, i32
  }
}

</mosaic_0001>

<bundles_post_ra>
// kernel: tpu_custom_call.1
= control target key start
LH: loop header
LB: loop body
LE: loop exit
PB: predicated region body
PF: predicated region fallthrough
CT: control target
= control target key end

     0   :  { %6 = vsyncpa [#allocation3], 0  ;;  %s126_s0 = inlined_call_operand.hbm [shape: f32[1,2048], index: 0, kind: input, shape index: {}]   ;;  %s127_s1 = inlined_call_operand.hbm [shape: f32[1,2048], index: 1, kind: output, shape index: {}]  }
   0x1   :  { %7 = vsyncpa [#allocation4], 0  ;;  %s13_s8 = sshll.u32 %s126_s0, 4  ;;  %s108_s9 = smov [#allocation2]   ;;  %s14_s8 = int_to_ptr.hbm [resolvable:$true] %s13_s8 }
   0x2   :  { %s15_s10 = sshll.u32 %s108_s9, 4  ;;  %s16_s10 = int_to_ptr.vmem [resolvable:$true] %s15_s10 }
   0x3   :  { %18 = dma.hbm_to_vmem [thread:$0]  %s14_s8, 256, %s16_s10, [#allocation3]  }
   0x4   :  { %104 = dma.done.wait [#allocation3], 256  }
   0x5   :  { %105 = vsyncadd [#allocation3], 4294967040  ;;  %v23_v0 = vld [vmem:[#allocation2] sm:$0xff]  ;;  %v24_v1 = vld [vmem:[#allocation2 + $0x8] sm:$0xff]  ;;  %s109_s11 = smov [#allocation5]   ;;  %s40_s0 = sshll.u32 %s127_s1, 4  ;;  %s41_s0 = int_to_ptr.hbm [resolvable:$true] %s40_s0 }
   0x6   :  { %52 = vtanh.f32 %v23_v0  ;;  %s38_s12 = sshll.u32 %s109_s11, 4  ;;  %s39_s12 = int_to_ptr.vmem [resolvable:$true] %s38_s12 }
   0x7   :  { %54 = vtanh.f32 %v24_v1 }
   0xc   :  { %v53_v2 = vpop.eup %52 }
   0xd   :  { %v55_v3 = vpop.eup %54  ;;  %v27_v4 = vmul.f32 0.5, %v53_v2 }
   0xe   :  { %v28_v5 = vmul.f32 0.5, %v55_v3 }
   0xf   :  { %v29_v6 = vadd.f32 0.5, %v27_v4 }
  0x10   :  { %v30_v7 = vadd.f32 0.5, %v28_v5 }
  0x11   :  { %31 = vst [vmem:[#allocation5] sm:$0xff] %v29_v6 }
  0x12   :  { %32 = vst [vmem:[#allocation5 + $0x8] sm:$0xff] %v30_v7 }
  0x13   :  { %43 = dma.vmem_to_hbm [thread:$0]  %s39_s12, 256, %s41_s0, [#allocation4]  }
  0x14   :  { %106 = dma.done.wait [#allocation4], 256  }
  0x15   :  { %107 = vsyncadd [#allocation4], 4294967040 }
  0x16   :  { %48 = vsyncpa [#allocation3], 1 }
  0x17   :  { %49 = vsyncpa [#allocation4], 1 }

</bundles_post_ra>
